<compile_context>
chip_gen: v7x
topology: tpu7x:2x2x1
jax: 0.10.0
libtpu: 0.0.40
codegen_flags: <defaults>
</compile_context>

<pallas_src>
import functools
import math

import jax
import jax.numpy as jnp
from jax.experimental import pallas as pl
from jax.experimental.pallas import tpu as pltpu


# ----------------------------- helpers ---------------------------------------

def _round_up(x, m):
    return ((x + m - 1) // m) * m


def _gelu(x, approx=False):
    if approx:
        # tanh approximation -> EUP (separate VLIW slot, essentially free),
        # but deviates from nn.GELU() default.
        return jax.nn.gelu(x, approximate=True)
    # Exact (erf-based) GELU, matching nn.GELU() default (approximate='none').
    return 0.5 * x * (1.0 + jax.lax.erf(x * (1.0 / math.sqrt(2.0))))


# ----------------------------- fused MLP kernel -------------------------------

def _mlp_kernel(x_ref, w1_ref, b1_ref, w2_ref, b2_ref, o_ref, acc_ref, *,
                approx_gelu):
    k = pl.program_id(1)

    @pl.when(k == 0)
    def _():
        acc_ref[...] = jnp.zeros_like(acc_ref)

    # dense1 chunk: (tile, D_in) @ (D_in, tk) -- bf16 operands, f32 accumulate.
    h = jnp.dot(x_ref[...], w1_ref[...], preferred_element_type=jnp.float32)
    h = _gelu(h + b1_ref[...], approx=approx_gelu)   # bias + GELU in f32
    # dropout1: identity in eval mode.

    # dense2 chunk: (tile, tk) @ (tk, D_out), accumulated over k in f32 VMEM.
    acc_ref[...] += jnp.dot(h.astype(w2_ref.dtype), w2_ref[...],
                            preferred_element_type=jnp.float32)

    @pl.when(k == pl.num_programs(1) - 1)
    def _():
        # dropout2: identity in eval mode.
        o_ref[...] = (acc_ref[...] + b2_ref[...]).astype(o_ref.dtype)


def vit_mlp(x, w1, b1, w2, b2, *, block_rows=512, block_hidden=512,
            matmul_dtype=jnp.bfloat16, approx_gelu=False):
    """Fused ViTMLP forward: gelu(x @ w1 + b1) @ w2 + b2 (dropout = identity).

    x : (..., D_in)      -- any leading dims, flattened to a row slab.
    w1: (D_in, M)   b1: (1, M)
    w2: (M, D_out)  b2: (1, D_out)
    """
    orig_lead = x.shape[:-1]
    d_in = x.shape[-1]
    d_hidden = w1.shape[1]
    d_out = w2.shape[1]
    out_dtype = x.dtype

    # --- flatten tokens; pre-cast activations once (halves x DMA bytes) ------
    x2 = x.reshape(-1, d_in).astype(matmul_dtype)
    rows = x2.shape[0]

    # --- row tile: multiple of 8 sublanes, balanced to avoid ~2x tail pad ----
    tile = min(block_rows, _round_up(rows, 8))
    n_row_tiles = pl.cdiv(rows, tile)
    tile = _round_up(pl.cdiv(rows, n_row_tiles), 8)
    rows_p = tile * n_row_tiles
    if rows_p != rows:
        x2 = jnp.pad(x2, ((0, rows_p - rows), (0, 0)))

    # --- hidden-dim (reduction) tiling ----------------------------------------
    if d_hidden <= block_hidden:
        n_k, tk, hidden_p = 1, d_hidden, d_hidden     # full-dim block is legal
    else:
        n_k = pl.cdiv(d_hidden, block_hidden)
        tk = _round_up(pl.cdiv(d_hidden, n_k), 128)   # lane-aligned chunk
        hidden_p = tk * n_k

    # --- lane-dense output: pad D_out up to a multiple of 128 ----------------
    d_out_p = _round_up(d_out, 128)

    # --- pad + pre-cast weights ONCE in the wrapper ---------------------------
    w1p = w1.astype(matmul_dtype)
    b1p = b1.astype(jnp.float32)
    w2p = w2.astype(matmul_dtype)
    b2p = b2.astype(jnp.float32)
    if hidden_p != d_hidden:
        w1p = jnp.pad(w1p, ((0, 0), (0, hidden_p - d_hidden)))
        b1p = jnp.pad(b1p, ((0, 0), (0, hidden_p - d_hidden)))
        w2p = jnp.pad(w2p, ((0, hidden_p - d_hidden), (0, 0)))
    if d_out_p != d_out:
        w2p = jnp.pad(w2p, ((0, 0), (0, d_out_p - d_out)))
        b2p = jnp.pad(b2p, ((0, 0), (0, d_out_p - d_out)))

    # --- explicit scoped-VMEM limit from the actual footprint -----------------
    mm_bytes = jnp.dtype(matmul_dtype).itemsize
    out_bytes = jnp.dtype(out_dtype).itemsize
    est = (2 * tile * d_in * mm_bytes        # x tile        (double-buffered)
           + 2 * d_in * tk * mm_bytes        # W1 chunk
           + 2 * tk * 4                      # b1 chunk (f32)
           + 2 * tk * d_out_p * mm_bytes     # W2 chunk
           + 2 * d_out_p * 4                 # b2 (tiny; default buffering)
           + 2 * tile * d_out_p * out_bytes  # output tile
           + tile * d_out_p * 4)             # f32 accumulator scratch
    vmem_limit = int(min(64 * 2**20, max(32 * 2**20, 2 * est)))

    out = pl.pallas_call(
        functools.partial(_mlp_kernel, approx_gelu=approx_gelu),
        out_shape=jax.ShapeDtypeStruct((rows_p, d_out_p), out_dtype),
        grid_spec=pltpu.PrefetchScalarGridSpec(
            num_scalar_prefetch=0,
            grid=(n_row_tiles, n_k),                    # reduction axis last
            in_specs=[
                pl.BlockSpec((tile, d_in), lambda i, k: (i, 0)),     # x tile
                pl.BlockSpec((d_in, tk), lambda i, k: (0, k)),       # W1 chunk
                pl.BlockSpec((1, tk), lambda i, k: (0, k)),          # b1 chunk
                pl.BlockSpec((tk, d_out_p), lambda i, k: (k, 0)),    # W2 chunk
                pl.BlockSpec((1, d_out_p), lambda i, k: (0, 0)),     # b2 (tiny)
            ],
            out_specs=pl.BlockSpec((tile, d_out_p), lambda i, k: (i, 0)),
            scratch_shapes=[pltpu.VMEM((tile, d_out_p), jnp.float32)],
        ),
        compiler_params=pltpu.CompilerParams(
            # Row tiles independent -> megacore; hidden axis is a reduction.
            dimension_semantics=("parallel", "arbitrary"),
            vmem_limit_bytes=vmem_limit,
        ),
    )(x2, w1p, b1p, w2p, b2p)

    if rows_p != rows:
        out = out[:rows]
    if d_out_p != d_out:
        out = out[:, :d_out]
    return out.reshape(*orig_lead, d_out)


# ----------------------------- references -------------------------------------

def _ref_mlp_f32(x, w1, b1, w2, b2):
    h = _gelu(jnp.dot(x.reshape(-1, x.shape[-1]), w1) + b1)
    y = jnp.dot(h, w2) + b2
    return y.reshape(*x.shape[:-1], w2.shape[1])


def _ref_mlp_bf16aware(x, w1, b1, w2, b2):
    f32 = jnp.float32
    xf = x.reshape(-1, x.shape[-1]).astype(jnp.bfloat16).astype(f32)
    w1f = w1.astype(jnp.bfloat16).astype(f32)
    w2f = w2.astype(jnp.bfloat16).astype(f32)
    h = _gelu(jnp.dot(xf, w1f) + b1.astype(f32))
    h = h.astype(jnp.bfloat16).astype(f32)
    y = jnp.dot(h, w2f) + b2.astype(f32)
    return y.reshape(*x.shape[:-1], w2.shape[1])


# ----------------------------- main -------------------------------------------

if __name__ == "__main__":
    key = jax.random.PRNGKey(0)

    # --- Test 1: small config consistent with the module (B,S,D)=(2,8,32),
    #     mlp_num_hiddens=64, mlp_num_outputs=32 (ViT MLP maps back to D). ----
    B, S, D = 2, 8, 32
    MLP_HIDDENS, MLP_OUT = 64, 32
    kx, k1, k2, k3, k4, key = jax.random.split(key, 6)
    x = jax.random.normal(kx, (B, S, D), dtype=jnp.float32)
    w1 = (jax.random.normal(k1, (D, MLP_HIDDENS)) / math.sqrt(D)).astype(jnp.float32)
    b1 = (0.01 * jax.random.normal(k2, (1, MLP_HIDDENS))).astype(jnp.float32)
    w2 = (jax.random.normal(k3, (MLP_HIDDENS, MLP_OUT)) / math.sqrt(MLP_HIDDENS)).astype(jnp.float32)
    b2 = (0.01 * jax.random.normal(k4, (1, MLP_OUT))).astype(jnp.float32)

    out = jax.block_until_ready(vit_mlp(x, w1, b1, w2, b2))
    ref = _ref_mlp_f32(x, w1, b1, w2, b2)
    assert out.shape == (B, S, MLP_OUT)
    assert jnp.all(jnp.isfinite(out))
    err = float(jnp.max(jnp.abs(out - ref)))
    assert err < 5e-2, f"test1 max abs err {err}"

    # --- Test 2: exercise the hidden-dim reduction axis and multi row tiles. --
    B2, S2, D2 = 2, 72, 128
    H2, O2 = 1024, 256
    kx, k1, k2, k3, k4, key = jax.random.split(key, 6)
    x_b = jax.random.normal(kx, (B2, S2, D2), dtype=jnp.float32)
    w1_b = (jax.random.normal(k1, (D2, H2)) / math.sqrt(D2)).astype(jnp.float32)
    b1_b = (0.01 * jax.random.normal(k2, (1, H2))).astype(jnp.float32)
    w2_b = (jax.random.normal(k3, (H2, O2)) / math.sqrt(H2)).astype(jnp.float32)
    b2_b = (0.01 * jax.random.normal(k4, (1, O2))).astype(jnp.float32)

    out_b = jax.block_until_ready(
        vit_mlp(x_b, w1_b, b1_b, w2_b, b2_b, block_rows=64, block_hidden=512))
    ref_b = _ref_mlp_bf16aware(x_b, w1_b, b1_b, w2_b, b2_b)
    assert out_b.shape == (B2, S2, O2)
    assert jnp.all(jnp.isfinite(out_b))
    err_b = float(jnp.max(jnp.abs(out_b - ref_b)))
    assert err_b < 5e-3, f"test2 max abs err {err_b}"

    print("KERNEL_OK")
</pallas_src>

<mosaic_0001>
module attributes {stable_mosaic.version = 11 : i64} {
  func.func @_mlp_kernel(%arg0: i32, %arg1: i32, %arg2: memref<16x32xbf16, #tpu.memory_space<vmem>>, %arg3: memref<32x64xbf16, #tpu.memory_space<vmem>>, %arg4: memref<1x64xf32, #tpu.memory_space<vmem>>, %arg5: memref<64x128xbf16, #tpu.memory_space<vmem>>, %arg6: memref<1x128xf32, #tpu.memory_space<vmem>>, %arg7: memref<16x128xf32, #tpu.memory_space<vmem>>, %arg8: memref<16x128xf32, #tpu.memory_space<vmem>>) attributes {dimension_semantics = [#tpu.dimension_semantics<parallel>, #tpu.dimension_semantics<arbitrary>], iteration_bounds = array<i64: 1, 1>, scalar_prefetch = 0 : i64, scratch_operands = 1 : i64, tpu.core_type = #tpu.core_type<tc>, window_params = [{transform_indices = @transform_0, window_bounds = array<i64: 16, 32>}, {transform_indices = @transform_1, window_bounds = array<i64: 32, 64>}, {transform_indices = @transform_2, window_bounds = array<i64: 1, 64>}, {transform_indices = @transform_3, window_bounds = array<i64: 64, 128>}, {pipeline_mode = #tpu.pipeline_mode<synchronous>, transform_indices = @transform_4, window_bounds = array<i64: 1, 128>}, {transform_indices = @transform_5, window_bounds = array<i64: 16, 128>}]} {
    %c0_i32 = arith.constant 0 : i32
    %0 = arith.cmpi eq, %arg1, %c0_i32 : i32
    %1 = arith.extui %0 : i1 to i32
    %c0_i32_0 = arith.constant 0 : i32
    %2 = arith.cmpi ne, %1, %c0_i32_0 : i32
    scf.if %2 {
      %cst_18 = arith.constant 0.000000e+00 : f32
      %26 = vector.broadcast %cst_18 : f32 to vector<16x128xf32>
      %c0_19 = arith.constant 0 : index
      %c0_20 = arith.constant 0 : index
      %27 = vector.load %arg8[%c0_19, %c0_20] : memref<16x128xf32, #tpu.memory_space<vmem>>, vector<16x128xf32>
      tpu.vector_store %arg8[%c0_19, %c0_20], %26 {strides = array<i32>} : memref<16x128xf32, #tpu.memory_space<vmem>>, vector<16x128xf32>,
    } else {
    }
    %c0 = arith.constant 0 : index
    %c0_1 = arith.constant 0 : index
    %3 = vector.load %arg2[%c0, %c0_1] : memref<16x32xbf16, #tpu.memory_space<vmem>>, vector<16x32xbf16>
    %c0_2 = arith.constant 0 : index
    %c0_3 = arith.constant 0 : index
    %4 = vector.load %arg3[%c0_2, %c0_3] : memref<32x64xbf16, #tpu.memory_space<vmem>>, vector<32x64xbf16>
    %cst = arith.constant dense<0.000000e+00> : vector<16x64xf32>
    %5 = tpu.matmul %3, %4, %cst {dimension_numbers = #tpu.dot_dimension_numbers<[1], [0], [0], [1], [0, 0, 1, 1], [], []>} : vector<16x32xbf16>, vector<32x64xbf16>, vector<16x64xf32> -> vector<16x64xf32>
    %c0_4 = arith.constant 0 : index
    %c0_5 = arith.constant 0 : index
    %6 = vector.load %arg4[%c0_4, %c0_5] : memref<1x64xf32, #tpu.memory_space<vmem>>, vector<1x64xf32>
    %7 = vector.broadcast %6 : vector<1x64xf32> to vector<16x64xf32>
    %8 = arith.addf %5, %7 : vector<16x64xf32>
    %cst_6 = arith.constant 5.000000e-01 : f32
    %9 = vector.broadcast %cst_6 : f32 to vector<16x64xf32>
    %10 = arith.mulf %9, %8 : vector<16x64xf32>
    %cst_7 = arith.constant 0.707106769 : f32
    %11 = vector.broadcast %cst_7 : f32 to vector<16x64xf32>
    %12 = arith.mulf %8, %11 : vector<16x64xf32>
    %13 = math.erf %12 : vector<16x64xf32>
    %cst_8 = arith.constant 1.000000e+00 : f32
    %14 = vector.broadcast %cst_8 : f32 to vector<16x64xf32>
    %15 = arith.addf %14, %13 : vector<16x64xf32>
    %16 = arith.mulf %10, %15 : vector<16x64xf32>
    %c0_9 = arith.constant 0 : index
    %c0_10 = arith.constant 0 : index
    %17 = vector.load %arg8[%c0_9, %c0_10] : memref<16x128xf32, #tpu.memory_space<vmem>>, vector<16x128xf32>
    %18 = arith.truncf %16 : vector<16x64xf32> to vector<16x64xbf16>
    %c0_11 = arith.constant 0 : index
    %c0_12 = arith.constant 0 : index
    %19 = vector.load %arg5[%c0_11, %c0_12] : memref<64x128xbf16, #tpu.memory_space<vmem>>, vector<64x128xbf16>
    %cst_13 = arith.constant dense<0.000000e+00> : vector<16x128xf32>
    %20 = tpu.matmul %18, %19, %cst_13 {dimension_numbers = #tpu.dot_dimension_numbers<[1], [0], [0], [1], [0, 0, 1, 1], [], []>} : vector<16x64xbf16>, vector<64x128xbf16>, vector<16x128xf32> -> vector<16x128xf32>
    %21 = arith.addf %17, %20 : vector<16x128xf32>
    %c0_14 = arith.constant 0 : index
    %c0_15 = arith.constant 0 : index
    %22 = vector.load %arg8[%c0_14, %c0_15] : memref<16x128xf32, #tpu.memory_space<vmem>>, vector<16x128xf32>
    tpu.vector_store %arg8[%c0_14, %c0_15], %21 {strides = array<i32>} : memref<16x128xf32, #tpu.memory_space<vmem>>, vector<16x128xf32>,
    %c0_i32_16 = arith.constant 0 : i32
    %23 = arith.cmpi eq, %arg1, %c0_i32_16 : i32
    %24 = arith.extui %23 : i1 to i32
    %c0_i32_17 = arith.constant 0 : i32
    %25 = arith.cmpi ne, %24, %c0_i32_17 : i32
    scf.if %25 {
      %c0_18 = arith.constant 0 : index
      %c0_19 = arith.constant 0 : index
      %26 = vector.load %arg8[%c0_18, %c0_19] : memref<16x128xf32, #tpu.memory_space<vmem>>, vector<16x128xf32>
      %c0_20 = arith.constant 0 : index
      %c0_21 = arith.constant 0 : index
      %27 = vector.load %arg6[%c0_20, %c0_21] : memref<1x128xf32, #tpu.memory_space<vmem>>, vector<1x128xf32>
      %28 = vector.broadcast %27 : vector<1x128xf32> to vector<16x128xf32>
      %29 = arith.addf %26, %28 : vector<16x128xf32>
      %c0_22 = arith.constant 0 : index
      %c0_23 = arith.constant 0 : index
      %30 = vector.load %arg7[%c0_22, %c0_23] : memref<16x128xf32, #tpu.memory_space<vmem>>, vector<16x128xf32>
      tpu.vector_store %arg7[%c0_22, %c0_23], %29 {strides = array<i32>} : memref<16x128xf32, #tpu.memory_space<vmem>>, vector<16x128xf32>,
    } else {
    }
    return
  }
  func.func @transform_0(%arg0: i32, %arg1: i32) -> (i32, i32) {
    %c0_i32 = arith.constant 0 : i32
    %c0_i32_0 = arith.constant 0 : i32
    return %arg0, %c0_i32 : i32, i32
  }
  func.func @transform_1(%arg0: i32, %arg1: i32) -> (i32, i32) {
    %c0_i32 = arith.constant 0 : i32
    %c0_i32_0 = arith.constant 0 : i32
    return %c0_i32, %arg1 : i32, i32
  }
  func.func @transform_2(%arg0: i32, %arg1: i32) -> (i32, i32) {
    %c0_i32 = arith.constant 0 : i32
    %c0_i32_0 = arith.constant 0 : i32
    return %c0_i32, %arg1 : i32, i32
  }
  func.func @transform_3(%arg0: i32, %arg1: i32) -> (i32, i32) {
    %c0_i32 = arith.constant 0 : i32
    %c0_i32_0 = arith.constant 0 : i32
    return %arg1, %c0_i32 : i32, i32
  }
  func.func @transform_4(%arg0: i32, %arg1: i32) -> (i32, i32) {
    %c0_i32 = arith.constant 0 : i32
    %c0_i32_0 = arith.constant 0 : i32
    %c0_i32_1 = arith.constant 0 : i32
    return %c0_i32, %c0_i32_0 : i32, i32
  }
  func.func @transform_5(%arg0: i32, %arg1: i32) -> (i32, i32) {
    %c0_i32 = arith.constant 0 : i32
    %c0_i32_0 = arith.constant 0 : i32
    return %arg0, %c0_i32 : i32, i32
  }
}

</mosaic_0001>

<bundles_post_ra>
// kernel: tpu_custom_call.1
= control target key start
LH: loop header
LB: loop body
LE: loop exit
PB: predicated region body
PF: predicated region fallthrough
CT: control target
= control target key end

     0   :  { %10 = vsyncpa [#allocation4], 0  ;;  %s536_s0 = inlined_call_operand.hbm [shape: bf16[16,32], index: 0, kind: input, shape index: {}]   ;;  %s537_s1 = inlined_call_operand.hbm [shape: bf16[32,64], index: 1, kind: input, shape index: {}]   ;;  %s538_s2 = inlined_call_operand.vmem [shape: f32[1,64], index: 2, kind: input, shape index: {}]   ;;  %s539_s3 = inlined_call_operand.hbm [shape: bf16[64,128], index: 3, kind: input, shape index: {}]   ;;  %s540_s4 = inlined_call_operand.vmem [shape: f32[1,128], index: 4, kind: input, shape index: {}]   ;;  %s541_s5 = inlined_call_operand.hbm [shape: f32[16,128], index: 5, kind: output, shape index: {}]  }
   0x1   :  { %11 = vsyncpa [#allocation7], 0 }
   0x2   :  { %12 = vsyncpa [#allocation5], 0  ;;  %s426_s18 = smov [#allocation6]   ;;  %s427_s20 = smov [#allocation3]  }
   0x3   :  { %s30_s19 = sshll.u32 %s426_s18, 4  ;;  %s18_s21 = sshll.u32 %s427_s20, 4  ;;  %s31_s19 = int_to_ptr.vmem [resolvable:$true] %s30_s19  ;;  %s466_s21 = int_to_ptr.vmem [resolvable:$true] %s18_s21 }
   0x4   :  { %s332_s24 = scalar_lea.hbm %s537_s1, 256 }
   0x5   :  { %p333_p0 = scmp.ne.s32.totalorder %s537_s1, %s332_s24  ;;  %p336_p1 = scmp.lt.u32.totalorder %s332_s24, %s537_s1 }
   0x7   :  { %p338_p2 = pnand %p336_p1, %p333_p0 }
   0x9   :  { %341 = shalt.err (!%p338_p2)
}
   0xa   :  { %s342_s29 = scalar_lea.vmem %s31_s19, 256  ;;  %p347_p4 = scmp.lt.s32.totalorder %s31_s19, %s31_s19 }
   0xb   :  { %p343_p3 = scmp.ne.s32.totalorder %s31_s19, %s342_s29  ;;  %p348_p5 = scmp.lt.s32.totalorder %s342_s29, %s342_s29 }
   0xd   :  { %p349_p6 = por %p348_p5, %p347_p4 }
   0xf   :  { %p350_p7 = pnand %p349_p6, %p343_p3 }
  0x11   :  { %353 = shalt.err (!%p350_p7)
}
  0x12   :  { %s428_s30 = smov 64   ;;  %s429_s6 = smov 4  }
  0x13   :  { %36 = dma.hbm_to_vmem [thread:$0]  %s537_s1, 256, %s31_s19, [#allocation7], %s428_s30, %s428_s30, %s429_s6  }
  0x14   :  { %s354_s11 = scalar_lea.hbm %s536_s0, 128 }
  0x15   :  { %p355_p8 = scmp.ne.s32.totalorder %s536_s0, %s354_s11  ;;  %p358_p9 = scmp.lt.u32.totalorder %s354_s11, %s536_s0 }
  0x17   :  { %p360_p10 = pnand %p358_p9, %p355_p8 }
  0x19   :  { %363 = shalt.err (!%p360_p10)
}
  0x1a   :  { %s364_s16 = scalar_lea.vmem %s466_s21, 128  ;;  %p369_p12 = scmp.lt.s32.totalorder %s466_s21, %s466_s21 }
  0x1b   :  { %p365_p11 = scmp.ne.s32.totalorder %s466_s21, %s364_s16  ;;  %p370_p13 = scmp.lt.s32.totalorder %s364_s16, %s364_s16 }
  0x1d   :  { %p371_p0 = por %p370_p13, %p369_p12 }
  0x1f   :  { %p372_p1 = pnand %p371_p0, %p365_p11 }
  0x21   :  { %375 = shalt.err (!%p372_p1)
}
  0x22   :  { %24 = dma.hbm_to_vmem [thread:$0]  %s536_s0, 128, %s466_s21, [#allocation4], %s428_s30, %s428_s30, %s429_s6  }
  0x23   :  { %s430_s18 = smov [#allocation8]   ;;  %s376_s23 = scalar_lea.hbm %s539_s3, 512 }
  0x24   :  { %s44_s19 = sshll.u32 %s430_s18, 4  ;;  %p377_p2 = scmp.ne.s32.totalorder %s539_s3, %s376_s23  ;;  %s45_s19 = int_to_ptr.vmem [resolvable:$true] %s44_s19 }
  0x25   :  { %p380_p3 = scmp.lt.u32.totalorder %s376_s23, %s539_s3 }
  0x27   :  { %p382_p4 = pnand %p380_p3, %p377_p2 }
  0x29   :  { %385 = shalt.err (!%p382_p4)
}
  0x2a   :  { %s386_s28 = scalar_lea.vmem %s45_s19, 512  ;;  %p391_p6 = scmp.lt.s32.totalorder %s45_s19, %s45_s19 }
  0x2b   :  { %p387_p5 = scmp.ne.s32.totalorder %s45_s19, %s386_s28  ;;  %p392_p7 = scmp.lt.s32.totalorder %s386_s28, %s386_s28 }
  0x2d   :  { %p393_p8 = por %p392_p7, %p391_p6 }
  0x2f   :  { %p394_p9 = pnand %p393_p8, %p387_p5 }
  0x31   :  { %397 = shalt.err (!%p394_p9)
}
  0x32   :  { %50 = dma.hbm_to_vmem [thread:$0]  %s539_s3, 512, %s45_s19, [#allocation7], %s428_s30, %s428_s30, %s429_s6  }
  0x33   :  { %420 = dma.done.wait [#allocation4], 128  }
  0x34   :  { %421 = vsyncadd [#allocation4], 4294967168 }
  0x35   :  { %422 = dma.done.wait [#allocation7], 768  }
  0x36   :  { %423 = vsyncadd [#allocation7], 4294966528  ;;  %v431_v0 = vmov 0.0   ;;  %vm432_vm0 = vmmov 0   ;;  %v321_v1 = vld [vmem:[#allocation6] sm:$0xff]   ;;  %v322_v2 = vld [vmem:[#allocation6 + $0x8] sm:$0xff]  }
  0x37   :  { %291 = vmatprep.subr.bf16.mxu0 %v431_v0  ;;  %295 = vmatprep.mubr.msk.bf16.mxu0 %vm432_vm0, %v431_v0  ;;  %v323_v3 = vld [vmem:[#allocation3] sm:$0xff]   ;;  %vm99_vm1 = vcmask 261120   ;;  %v324_v4 = vld [vmem:[#allocation8] sm:$0xff]   ;;  %v326_v6 = vld [vmem:[#allocation8 + $0x10] sm:$0xff]   ;;  %vm189_vm2 = vcmask 523264   ;;  %s433_s6 = smov [#allocation9]  }
  0x38   :  { %299 = vmatprep.subr.bf16.mxu1 %v431_v0  ;;  %307 = vmatprep.mubr.msk.bf16.mxu1 %vm432_vm0, %v431_v0  ;;  %v325_v5 = vld [vmem:[#allocation8 + $0x8] sm:$0xff]   ;;  %v327_v7 = vld [vmem:[#allocation8 + $0x18] sm:$0xff]   ;;  %s259_s7 = sshll.u32 %s433_s6, 4  ;;  %s260_s7 = int_to_ptr.vmem [resolvable:$true] %s259_s7 }
  0x39   :  { %292 = vmatpush3.bf16.msra.mxu0 %v321_v1  ;;  %300 = vmatpush3.bf16.msra.mxu1 %v324_v4  ;;  %v272_v8 = vld [vmem:[%s538_s2] ss:$0 sm:$0xff]  ;;  %s398_s8 = scalar_lea.vmem %s260_s7, 256  ;;  %p403_p11 = scmp.lt.s32.totalorder %s260_s7, %s260_s7 }
  0x3a   :  { %293 = vmatprep.subr.bf16.mxu0 %v431_v0  ;;  %301 = vmatprep.subr.bf16.mxu1 %v431_v0  ;;  %v282_v26 = vld [vmem:[%s540_s4] ss:$0 sm:$0xff]  ;;  %p399_p10 = scmp.ne.s32.totalorder %s260_s7, %s398_s8  ;;  %p404_p12 = scmp.lt.s32.totalorder %s398_s8, %s398_s8 }
  0x3c   :  { %p405_p13 = por %p404_p12, %p403_p11 }
  0x3d   :  { %294 = vmatpush3.bf16.msra.mxu0 %v322_v2  ;;  %302 = vmatpush3.bf16.msra.mxu1 %v325_v5 }
  0x3e   :  { %303 = vmatprep.subr.bf16.mxu1 %v431_v0  ;;  %p406_p0 = pnand %p405_p13, %p399_p10 }
  0x40   :  { %296 = vmatmul.mubr.msk.bf16.vlgmr.msra.gmra.mrb[0].mxu0 %vm99_vm1, %v323_v3 }
  0x41   :  { %304 = vmatpush3.bf16.msra.mxu1 %v326_v6 }
  0x42   :  { %305 = vmatprep.subr.bf16.mxu1 %v431_v0 }
  0x45   :  { %306 = vmatpush3.bf16.msra.mxu1 %v327_v7 }
 0x113   :  { %v137_v9 = vpop.f32.mrb[0].mxu0 }
 0x114   :  { %v138_v10 = vadd.f32 %v272_v8, %v137_v9  ;;  %v297_v11 = vpop.f32.mrb[1].mxu0 }
 0x115   :  { %v140_v12 = vpop.f32.mrb[2].mxu0 }
 0x116   :  { %v146_v13 = vmul.f32 0.70710677, %v138_v10  ;;  %v141_v14 = vadd.f32 %v272_v8, %v140_v12  ;;  %v298_v15 = vpop.f32.mrb[3].mxu0  ;;  %v144_v20 = vmul.f32 0.5, %v138_v10 }
 0x118   :  { %328 = verf.f32 %v146_v13  ;;  %v147_v16 = vmul.f32 0.70710677, %v141_v14  ;;  %v145_v21 = vmul.f32 0.5, %v141_v14 }
 0x11a   :  { %330 = verf.f32 %v147_v16 }
 0x122   :  { %v329_v17 = vpop.eup %328 }
 0x123   :  { %v150_v18 = vadd.f32 1.0, %v329_v17 }
 0x124   :  { %v331_v19 = vpop.eup %330 }
 0x125   :  { %v151_v22 = vadd.f32 1.0, %v331_v19  ;;  %v152_v23 = vmul.f32 %v150_v18, %v144_v20 }
 0x127   :  { %v153_v24 = vmul.f32 %v151_v22, %v145_v21 }
 0x129   :  { %v156_v25 = vpack.c.bf16 %v153_v24, %v152_v23 }
 0x12b   :  { %308 = vmatmul.mubr.msk.bf16.vlgmr.msra.gmra.mrb[0].mxu1 %vm189_vm2, %v156_v25 }
 0x1fe   :  { %v227_v27 = vpop.f32.mrb[0].mxu1 }
 0x1ff   :  { %v250_v28 = vadd.f32 %v282_v26, %v227_v27  ;;  %v309_v29 = vpop.f32.mrb[1].mxu1 }
 0x200   :  { %v230_v30 = vpop.f32.mrb[2].mxu1 }
 0x201   :  { %252 = vst [vmem:[#allocation9] sm:$0xff] %v250_v28  ;;  %v251_v31 = vadd.f32 %v282_v26, %v230_v30  ;;  %v310_v32 = vpop.f32.mrb[3].mxu1 }
 0x203   :  { %253 = vst [vmem:[#allocation9 + $0x8] sm:$0xff] %v251_v31 }
 0x204   :  { %409 = shalt.err (!%p406_p0)
}
 0x205   :  { %s410_s10 = scalar_lea.hbm %s541_s5, 256 }
 0x206   :  { %p411_p1 = scmp.ne.s32.totalorder %s541_s5, %s410_s10  ;;  %p414_p2 = scmp.lt.u32.totalorder %s410_s10, %s541_s5 }
 0x208   :  { %p416_p3 = pnand %p414_p2, %p411_p1 }
 0x20a   :  { %419 = shalt.err (!%p416_p3)
}
 0x20b   :  { %s434_s15 = smov 128   ;;  %s435_s16 = smov 8  }
 0x20c   :  { %265 = dma.vmem_to_hbm [thread:$0]  %s260_s7, 256, %s541_s5, [#allocation5], %s434_s15, %s434_s15, %s435_s16  }
 0x20d   :  { %424 = dma.done.wait [#allocation5], 256  }
 0x20e   :  { %425 = vsyncadd [#allocation5], 4294967040 }
 0x20f   :  { %269 = vsyncpa [#allocation4], 1 }
 0x210   :  { %270 = vsyncpa [#allocation7], 1 }
 0x211   :  { %271 = vsyncpa [#allocation5], 1 }

</bundles_post_ra>
